<compile_context>
chip_gen: v7x
topology: tpu7x:2x2x1
jax: 0.10.0
libtpu: 0.0.40
codegen_flags: <defaults>
</compile_context>

<pallas_src>
import functools

import jax
import jax.numpy as jnp
from jax.experimental import pallas as pl
from jax.experimental.pallas import tpu as pltpu


_SUB = 16    # sublane alignment (bf16-native tile height; also valid for f32)
_LANE = 128  # lane alignment


def _round_up(x: int, m: int) -> int:
    return (x + m - 1) // m * m


# --------------------- generation-dependent VMEM budgets --------------------


def _vmem_budgets():
    """Returns (per-weight-buffer budget bytes, vmem_limit_bytes)."""
    try:
        phys = getattr(pltpu.get_tpu_info(), "vmem_capacity_bytes", None)
    except Exception:
        phys = None
    if phys is None:
        phys = 64 * 1024 * 1024  # conservative: assume v7x-sized VMEM
    if phys >= 96 * 1024 * 1024:
        # v5e / v6e: 128 MiB physical VMEM -> large weight tiles, fewer K steps.
        return 16 * 1024 * 1024, 64 * 1024 * 1024
    # v7x: 64 MiB physical VMEM per TensorCore -> keep headroom.
    return 12 * 1024 * 1024, 48 * 1024 * 1024


# ------------------------------ kernels --------------------------------------


def _linear_kernel_fullk(x_ref, w_ref, b_ref, o_ref, *, apply_relu: bool):
    """Single-pass (tm, tn) output tile: full-K reduction in one MXU call."""
    x = x_ref[...]
    if x.dtype != w_ref.dtype:
        x = x.astype(w_ref.dtype)
    out = jnp.dot(x, w_ref[...], preferred_element_type=jnp.float32)
    out = out + b_ref[...]  # (1, tn) broadcasts over rows
    if apply_relu:
        out = jnp.maximum(out, 0.0)
    o_ref[...] = out.astype(o_ref.dtype)


def _linear_kernel_acc(x_ref, w_ref, b_ref, o_ref, acc_ref, *, apply_relu: bool):
    """(tm, tn) output tile; reduction over K tiles on grid axis 2.

    Bias is folded into the accumulator init at k == 0 (no epilogue add).
    """
    k = pl.program_id(2)

    @pl.when(k == 0)
    def _():
        acc_ref[...] = jnp.broadcast_to(b_ref[...], acc_ref.shape).astype(
            jnp.float32
        )

    x = x_ref[...]
    if x.dtype != w_ref.dtype:
        x = x.astype(w_ref.dtype)
    acc_ref[...] += jnp.dot(x, w_ref[...], preferred_element_type=jnp.float32)

    @pl.when(k == pl.num_programs(2) - 1)
    def _():
        out = acc_ref[...]
        if apply_relu:
            out = jnp.maximum(out, 0.0)
        o_ref[...] = out.astype(o_ref.dtype)


# ------------------------------ tile planning --------------------------------


def _pick_tn(n_padded: int) -> int:
    """Largest lane tile dividing Np, preferring >= 2 N tiles (megacore split)."""
    for tn in (1024, 512, 256, 128):
        if n_padded % tn == 0 and n_padded // tn >= 2:
            return tn
    for tn in (1024, 512, 256, 128):
        if n_padded % tn == 0:
            return tn
    return n_padded


def _pick_tk(Kp: int, tn: int, itemsize: int, budget: int):
    """Largest multiple of 128 dividing Kp whose (tk, tn) weight tile fits."""
    max_tk = max((budget // (tn * itemsize)) // _LANE * _LANE, _LANE)
    for cand in range(min(max_tk, Kp), _LANE - 1, -_LANE):
        if Kp % cand == 0:
            return Kp, cand
    return Kp, _LANE  # unreachable: Kp is a multiple of 128


def _pick_tm(M, tk, tn, x_itemsize, out_itemsize, w_tile_bytes, vmem_limit,
             use_acc):
    """Cover the batch in as few M tiles as possible (ideally one), so weights
    are streamed from HBM exactly once, subject to a VMEM estimate."""
    budget = vmem_limit - 2 * w_tile_bytes - (4 << 20)  # slack for misc

    def est(t):
        e = 2 * t * tk * x_itemsize + 2 * t * tn * out_itemsize
        if use_acc:
            e += t * tn * 4  # f32 accumulator scratch
        return e

    mp0 = _round_up(M, _SUB)
    tm = mp0 if mp0 <= 512 else 512
    while tm > _SUB and est(tm) > budget:
        tm = _round_up(tm // 2, _SUB)
    tm = max(tm, _SUB)
    return _round_up(M, tm), tm


# ------------------------------ one linear layer -----------------------------


class _PallasLinear:
    """Linear(+ReLU) layer: pre-padded bf16 weights and a frozen tile plan."""

    def __init__(self, w, b, *, apply_relu, out_dtype, w_budget, vmem_limit):
        K, N = w.shape
        self.K, self.N = K, N
        self.apply_relu = apply_relu
        self.out_dtype = out_dtype
        self.vmem_limit = vmem_limit

        w = w.astype(jnp.bfloat16)  # streamed dtype (MXU-native); acc is f32
        itemsize = 2

        Np = _round_up(N, _LANE)
        tn = _pick_tn(Np)
        Kp = _round_up(K, _LANE)
        if Kp * tn * itemsize <= w_budget:
            full_k, tk = True, Kp
        else:
            full_k = False
            Kp, tk = _pick_tk(Kp, tn, itemsize, w_budget)

        self.Kp, self.Np, self.tn, self.tk, self.full_k = Kp, Np, tn, tk, full_k
        self.w_tile_bytes = tk * tn * itemsize

        # Pre-pad weights/bias ONCE (zeros contribute nothing to the matmul).
        if (Kp, Np) != (K, N):
            w = jnp.zeros((Kp, Np), jnp.bfloat16).at[:K, :N].set(w)
        self.w = w
        b = b.reshape(1, N).astype(jnp.float32)
        if Np != N:
            b = jnp.zeros((1, Np), jnp.float32).at[:, :N].set(b)
        self.b = b

    def __call__(self, x):
        M, K = x.shape
        assert K == self.K, (K, self.K)
        x_itemsize = jnp.dtype(x.dtype).itemsize
        out_itemsize = jnp.dtype(self.out_dtype).itemsize

        Mp, tm = _pick_tm(M, self.tk, self.tn, x_itemsize, out_itemsize,
                          self.w_tile_bytes, self.vmem_limit,
                          use_acc=not self.full_k)

        xp = x
        if (Mp, self.Kp) != (M, K):
            xp = jnp.zeros((Mp, self.Kp), x.dtype).at[:M, :K].set(x)

        tn, tk, Np, Kp = self.tn, self.tk, self.Np, self.Kp

        if self.full_k:
            kernel = functools.partial(
                _linear_kernel_fullk, apply_relu=self.apply_relu)
            grid = (Mp // tm, Np // tn)
            in_specs = [
                pl.BlockSpec((tm, Kp), lambda i, j: (i, 0)),
                pl.BlockSpec((Kp, tn), lambda i, j: (0, j)),
                pl.BlockSpec((1, tn), lambda i, j: (0, j)),
            ]
            out_specs = pl.BlockSpec((tm, tn), lambda i, j: (i, j))
            scratch_shapes = []
            dim_sem = ("parallel", "parallel")
        else:
            kernel = functools.partial(
                _linear_kernel_acc, apply_relu=self.apply_relu)
            grid = (Mp // tm, Np // tn, Kp // tk)
            in_specs = [
                pl.BlockSpec((tm, tk), lambda i, j, k: (i, k)),
                pl.BlockSpec((tk, tn), lambda i, j, k: (k, j)),
                pl.BlockSpec((1, tn), lambda i, j, k: (0, j)),
            ]
            out_specs = pl.BlockSpec((tm, tn), lambda i, j, k: (i, j))
            scratch_shapes = [pltpu.VMEM((tm, tn), jnp.float32)]
            dim_sem = ("parallel", "parallel", "arbitrary")

        out = pl.pallas_call(
            kernel,
            out_shape=jax.ShapeDtypeStruct((Mp, Np), self.out_dtype),
            grid_spec=pltpu.PrefetchScalarGridSpec(
                num_scalar_prefetch=0,
                grid=grid,
                in_specs=in_specs,
                out_specs=out_specs,
                scratch_shapes=scratch_shapes,
            ),
            compiler_params=pltpu.CompilerParams(
                dimension_semantics=dim_sem,
                vmem_limit_bytes=self.vmem_limit,
            ),
        )(xp, self.w, self.b)

        if (Mp, Np) != (M, self.N):
            out = out[:M, :self.N]
        return out


# ------------------------------ module ---------------------------------------


class Stage1Pallas:
    """Mirror of the PyTorch Stage1 (VGG classifier head), eval mode."""

    def __init__(self, d_in: int, hidden: int, num_classes: int, key):
        k1, k2, k3 = jax.random.split(key, 3)
        w_budget, vmem_limit = _vmem_budgets()

        # PyTorch init: weight ~ N(0, 0.01), bias = 0.
        w1 = 0.01 * jax.random.normal(k1, (d_in, hidden), jnp.float32)
        w2 = 0.01 * jax.random.normal(k2, (hidden, hidden), jnp.float32)
        w3 = 0.01 * jax.random.normal(k3, (hidden, num_classes), jnp.float32)

        def zeros(n):
            return jnp.zeros((n,), jnp.float32)

        # Hidden activations flow in bf16; only the final logits are f32.
        self.l1 = _PallasLinear(w1, zeros(hidden), apply_relu=True,
                                out_dtype=jnp.bfloat16,
                                w_budget=w_budget, vmem_limit=vmem_limit)
        self.l2 = _PallasLinear(w2, zeros(hidden), apply_relu=True,
                                out_dtype=jnp.bfloat16,
                                w_budget=w_budget, vmem_limit=vmem_limit)
        self.l3 = _PallasLinear(w3, zeros(num_classes), apply_relu=False,
                                out_dtype=jnp.float32,
                                w_budget=w_budget, vmem_limit=vmem_limit)

    def __call__(self, x):
        # Cast activations to the streamed/MXU dtype once at the boundary.
        h = x.astype(jnp.bfloat16)
        h = self.l1(h)      # Linear -> ReLU   (Dropout = identity, eval mode)
        h = self.l2(h)      # Linear -> ReLU   (Dropout = identity, eval mode)
        return self.l3(h)   # final Linear (logits)


if __name__ == "__main__":
    # Small shapes consistent with the module's structure
    # (real VGG head is 25088 -> 4096 -> 4096 -> 1000; scaled down here).
    # NUM_CLASSES=100 and B=4 deliberately exercise the padding path.
    B = 4
    D_IN = 1024        # stands in for 512*7*7
    HIDDEN = 512       # stands in for 4096
    NUM_CLASSES = 100  # stands in for 1000

    key = jax.random.PRNGKey(0)
    k_params, k_x = jax.random.split(key)

    model = Stage1Pallas(D_IN, HIDDEN, NUM_CLASSES, k_params)
    x = jax.random.normal(k_x, (B, D_IN), jnp.float32)

    y = model(x)
    jax.block_until_ready(y)

    # Pure-JAX reference with the same bf16 quantization the kernel applies.
    def ref(xin):
        def lin(h, layer, relu):
            w = layer.w[: layer.K, : layer.N]
            b = layer.b[0, : layer.N]
            o = jnp.dot(h.astype(jnp.bfloat16), w,
                        preferred_element_type=jnp.float32) + b
            if relu:
                o = jnp.maximum(o, 0.0)
            return o.astype(layer.out_dtype)

        h = lin(xin, model.l1, True)
        h = lin(h, model.l2, True)
        return lin(h, model.l3, False)

    y_ref = ref(x).astype(jnp.float32)
    assert y.shape == (B, NUM_CLASSES), y.shape
    max_err = float(jnp.max(jnp.abs(y - y_ref)))
    assert jnp.allclose(y, y_ref, atol=5e-3, rtol=5e-2), max_err

    print("KERNEL_OK")
</pallas_src>

<mosaic_0001>
module attributes {stable_mosaic.version = 11 : i64} {
  func.func @_linear_kernel_fullk(%arg0: i32, %arg1: i32, %arg2: memref<16x1024xbf16, #tpu.memory_space<vmem>>, %arg3: memref<1024x256xbf16, #tpu.memory_space<vmem>>, %arg4: memref<1x256xf32, #tpu.memory_space<vmem>>, %arg5: memref<16x256xbf16, #tpu.memory_space<vmem>>) attributes {dimension_semantics = [#tpu.dimension_semantics<parallel>, #tpu.dimension_semantics<parallel>], iteration_bounds = array<i64: 1, 2>, scalar_prefetch = 0 : i64, scratch_operands = 0 : i64, tpu.core_type = #tpu.core_type<tc>, window_params = [{transform_indices = @transform_0, window_bounds = array<i64: 16, 1024>}, {transform_indices = @transform_1, window_bounds = array<i64: 1024, 256>}, {transform_indices = @transform_2, window_bounds = array<i64: 1, 256>}, {transform_indices = @transform_3, window_bounds = array<i64: 16, 256>}]} {
    %c0 = arith.constant 0 : index
    %c0_0 = arith.constant 0 : index
    %0 = vector.load %arg2[%c0, %c0_0] : memref<16x1024xbf16, #tpu.memory_space<vmem>>, vector<16x1024xbf16>
    %c0_1 = arith.constant 0 : index
    %c0_2 = arith.constant 0 : index
    %1 = vector.load %arg3[%c0_1, %c0_2] : memref<1024x256xbf16, #tpu.memory_space<vmem>>, vector<1024x256xbf16>
    %cst = arith.constant dense<0.000000e+00> : vector<16x256xf32>
    %2 = tpu.matmul %0, %1, %cst {dimension_numbers = #tpu.dot_dimension_numbers<[1], [0], [0], [1], [0, 0, 1, 1], [], []>} : vector<16x1024xbf16>, vector<1024x256xbf16>, vector<16x256xf32> -> vector<16x256xf32>
    %c0_3 = arith.constant 0 : index
    %c0_4 = arith.constant 0 : index
    %3 = vector.load %arg4[%c0_3, %c0_4] : memref<1x256xf32, #tpu.memory_space<vmem>>, vector<1x256xf32>
    %4 = vector.broadcast %3 : vector<1x256xf32> to vector<16x256xf32>
    %5 = arith.addf %2, %4 : vector<16x256xf32>
    %cst_5 = arith.constant 0.000000e+00 : f32
    %6 = vector.broadcast %cst_5 : f32 to vector<16x256xf32>
    %7 = arith.maximumf %5, %6 : vector<16x256xf32>
    %8 = arith.truncf %7 : vector<16x256xf32> to vector<16x256xbf16>
    %c0_6 = arith.constant 0 : index
    %c0_7 = arith.constant 0 : index
    %9 = vector.load %arg5[%c0_6, %c0_7] : memref<16x256xbf16, #tpu.memory_space<vmem>>, vector<16x256xbf16>
    tpu.vector_store %arg5[%c0_6, %c0_7], %8 {strides = array<i32>} : memref<16x256xbf16, #tpu.memory_space<vmem>>, vector<16x256xbf16>,
    return
  }
  func.func @transform_0(%arg0: i32, %arg1: i32) -> (i32, i32) {
    %c0_i32 = arith.constant 0 : i32
    %c0_i32_0 = arith.constant 0 : i32
    return %arg0, %c0_i32 : i32, i32
  }
  func.func @transform_1(%arg0: i32, %arg1: i32) -> (i32, i32) {
    %c0_i32 = arith.constant 0 : i32
    %c0_i32_0 = arith.constant 0 : i32
    return %c0_i32, %arg1 : i32, i32
  }
  func.func @transform_2(%arg0: i32, %arg1: i32) -> (i32, i32) {
    %c0_i32 = arith.constant 0 : i32
    %c0_i32_0 = arith.constant 0 : i32
    return %c0_i32, %arg1 : i32, i32
  }
  func.func @transform_3(%arg0: i32, %arg1: i32) -> (i32, i32) {
    %c0_i32 = arith.constant 0 : i32
    return %arg0, %arg1 : i32, i32
  }
}

</mosaic_0001>

<bundles_post_ra>
// kernel: tpu_custom_call.1
= control target key start
LH: loop header
LB: loop body
LE: loop exit
PB: predicated region body
PF: predicated region fallthrough
CT: control target
= control target key end

     0   :  { %8 = vsyncpa [#allocation3], 0  ;;  %s2389_s0 = inlined_call_operand.hbm [shape: bf16[16,1024], index: 0, kind: input, shape index: {}]   ;;  %s2390_s1 = inlined_call_operand.hbm [shape: bf16[1024,512], index: 1, kind: input, shape index: {}]   ;;  %s2391_s2 = inlined_call_operand.vmem [shape: f32[1,512], index: 2, kind: input, shape index: {}]   ;;  %s2392_s3 = inlined_call_operand.hbm [shape: bf16[16,512], index: 3, kind: output, shape index: {}]  }
   0x1   :  { %9 = vsyncpa [#allocation6], 0 }
   0x2   :  { %11 = vsyncpa [#allocation6 + $0x1], 0 }
   0x3   :  { %12 = vsyncpa [#allocation4], 0 }
   0x4   :  { %14 = vsyncpa [#allocation4 + $0x1], 0  ;;  %s2018_s12 = smov 0   ;;  %s2020_s13 = smov 0  }
   0x5   :  { %s2022_s14 = smov 0   ;;  %s2024_s15 = smov 0  }
   0x6   :  { %s2026_s16 = smov 0   ;;  %s2028_s17 = smov 0  }
   0x7 LB: > { %s1392_s18 = sadd.s32 4294967295, %s1985_s17   ;;  %s1393_s19 = sadd.s32 4294967294, %s1985_s17   ;;  %s1985_s17 = sphi %s2028_s17, %s20_s17   ;;  %s1981_s16 = sphi %s2026_s16, %s2418_s16   ;;  %s1977_s15 = sphi %s2024_s15, %s2417_s15   ;;  %s1973_s14 = sphi %s2022_s14, %s2416_s14   ;;  %s1969_s13 = sphi %s2020_s13, %s2415_s13   ;;  %s1965_s12 = sphi %s2018_s12, %s2414_s12  }
   0x8   : > { %p72_p0 = scmp.ne.s32.totalorder %s1973_s14, %s1969_s13  ;;  %p73_p1 = scmp.eq.s32.totalorder %s1985_s17, 0 }
   0x9   : > { %p78_p2 = scmp.ne.s32.totalorder %s1969_s13, %s1965_s12  ;;  %p2055_p3 = scmp.eq.s32.totalorder %s1392_s18, 0 }
   0xa   : > { %p2059_p4 = por %p73_p1, %p72_p0  ;;  %p130_p5 = scmp.eq.s32.totalorder %s1392_s18, 1 }
   0xb   : > { %s2399_s20 = scalar_select %p2055_p3, 1, 0 }
   0xc   : > { %p2065_p6 = por %p2055_p3, %p78_p2  ;;  %p136_p7 = scmp.eq.s32.totalorder %s1393_s19, 1 }
   0xd   : > { %p2069_p8 = por %p130_p5, %p72_p0  ;;  %p1394_p9 = scmp.ge.s32.totalorder %s1985_s17, 1 }
   0xe   : > { %s2401_s22 = scalar_select %p2065_p6, 1, 0 }
   0xf   : > { %s2402_s23 = scalar_select %p2069_p8, 1, 0 }
  0x10   : > { %p2074_p10 = por %p136_p7, %p78_p2  ;;  %p143_p11 = scmp.lt.s32.totalorder %s1985_s17, 3 }
  0x11   : > { %s1987_s26 = smov [#allocation2]   ;;  %p1589_p1 = scmp.lt.s32.totalorder %s1985_s17, 2 }
  0x12   : > { %s2403_s24 = scalar_select %p2074_p10, 1, 0 }
  0x13   : > { %p2079_p12 = pnand %p1394_p9, %p143_p11  ;;  %s159_s27 = sshll.u32 %s1987_s26, 4  ;;  %s2083_s27 = int_to_ptr.vmem [resolvable:$true] %s159_s27 }
  0x14   : > { %p2097_p2 = pnand %p1589_p1, %p2059_p4  ;;  %s29_s30 = sadd.s32 1, %s1981_s16 }
  0x15   : > { %s2404_s25 = scalar_select %p2079_p12, 1, 0 }
  0x16   : > { %p1576_p13 = pneg %p2079_p12  ;;  %s1841_s6 = scalar_lea.hbm %s2389_s0, 1024 }
  0x17   : > { %s2406_s29 = scalar_select %p2097_p2, 1, 0 }
  0x18   : > { %p2091_p5 = pnand %p1576_p13, %p2055_p3  ;;  %p1842_p7 = scmp.ne.s32.totalorder %s2389_s0, %s1841_s6 }
  0x19   : > { %p1848_p4 = scmp.lt.u32.totalorder %s1841_s6, %s2389_s0 }
  0x1a   : > { %p1843_p9 = pneg %p2091_p5 }
  0x1c   : > { %p1844_p11 = pnand %p1843_p9, %p1842_p7 }
  0x1e   : > { %p1845_p13 = pneg %p1844_p11 }
  0x20   : > { %p1850_p1 = pnand %p1848_p4, %p1845_p13 }
  0x22   : > { %1853 = shalt.err (!%p1850_p1)
}
  0x23   : > { %s1854_s11 = scalar_lea.vmem %s2083_s27, 1024  ;;  %p1862_p6 = scmp.lt.s32.totalorder %s2083_s27, %s2083_s27 }
  0x24   : > { %p1855_p0 = scmp.ne.s32.totalorder %s2083_s27, %s1854_s11  ;;  %p1863_p3 = scmp.lt.s32.totalorder %s1854_s11, %s1854_s11 }
  0x26   : > { %p1857_p10 = pnand %p1855_p0, %p1843_p9  ;;  %p1864_p12 = por %p1863_p3, %p1862_p6 }
  0x28   : > { %p1858_p8 = pneg %p1857_p10 }
  0x2a   : > { %p1865_p2 = pnand %p1864_p12, %p1858_p8 }
  0x2c   : > { %1868 = shalt.err (!%p1865_p2)
}
  0x2d   : > { %s1988_s18 = smov 512   ;;  %s1989_s19 = smov 32  }
  0x2e   : > { %1579 = dma.hbm_to_vmem [thread:$0]  (!%p2091_p5), %s2389_s0, 1024, %s2083_s27, [#allocation3], %s1988_s18, %s1988_s18, %s1989_s19  }
  0x2f   : > { %p30_p10 = scmp.ge.s32.totalorder %s29_s30, 2  ;;  %s65_s4 = sadd.s32 1, %s1973_s14 }
  0x30   : > { %s173_s5 = sand.u32 1, %s1973_s14   ;;  %s1548_s8 = sshll.u32 %s1981_s16, 7 }
  0x31   : > { %s2420_s30 = smov (%p30_p10, %s29_s30), 0  ;;  %s1397_s6 = sshll.u32 %s173_s5, 10 }
  0x32   : > { %s62_s7 = ssub.s32 %s1981_s16, %s2420_s30  ;;  %s2133_s28 = scalar_lea.hbm %s2390_s1, %s1548_s8 }
  0x33   : > { %p63_p3 = scmp.eq.s32.totalorder %s62_s7, 0  ;;  %s177_s27 = scalar_lea.vmem [#allocation5], %s1397_s6 }
  0x34   : > { %s184_s11 = sshll.u32 %s177_s27, 4  ;;  %s2140_s19 = scalar_lea.sflag [#allocation6], %s173_s5  ;;  %s2138_s11 = int_to_ptr.vmem [resolvable:$true] %s184_s11 }
  0x35   : > { %s2136_s18 = scalar_select %p63_p3, %s1973_s14, %s65_s4  }
  0x36   : > { %s1869_s21 = scalar_lea.hbm %s2133_s28, 16384  ;;  %p2407_p8 = scmp.ne.s32.totalorder %s2406_s29, 0 }
  0x37   : > { %p1870_p6 = scmp.ne.s32.totalorder %s2133_s28, %s1869_s21  ;;  %s1874_s8 = scalar_lea.hbm %s2390_s1, 32768 }
  0x38   : > { %p1871_p12 = pneg %p2407_p8  ;;  %p1875_p2 = scmp.lt.u32.totalorder %s2133_s28, %s2390_s1 }
  0x39   : > { %p1876_p7 = scmp.lt.u32.totalorder %s1874_s8, %s1869_s21  ;;  %p1878_p11 = scmp.lt.u32.totalorder %s1869_s21, %s2133_s28 }
  0x3a   : > { %p1872_p0 = pnand %p1871_p12, %p1870_p6 }
  0x3b   : > { %p1877_p9 = por %p1876_p7, %p1875_p2 }
  0x3c   : > { %p1873_p5 = pneg %p1872_p0 }
  0x3d   : > { %p1879_p13 = por %p1878_p11, %p1877_p9 }
  0x3f   : > { %p1880_p4 = pnand %p1879_p13, %p1873_p5 }
  0x41   : > { %1883 = shalt.err (!%p1880_p4)
}
  0x42   : > { %s1884_s4 = scalar_lea.vmem %s2138_s11, 16384  ;;  %s1990_s5 = smov [#allocation5]  }
  0x43   : > { %p1885_p1 = scmp.ne.s32.totalorder %s2138_s11, %s1884_s4  ;;  %s1889_s10 = sshll.u32 %s1990_s5, 4  ;;  %s1890_s10 = int_to_ptr.vmem [resolvable:$false] %s1889_s10 }
  0x44   : > { %s1891_s27 = scalar_lea.vmem %s1890_s10, 32768  ;;  %p1892_p6 = scmp.lt.s32.totalorder %s2138_s11, %s1890_s10 }
  0x45   : > { %p1887_p10 = pnand %p1885_p1, %p1871_p12  ;;  %p1893_p0 = scmp.lt.s32.totalorder %s1891_s27, %s1884_s4 }
  0x47   : > { %p1888_p3 = pneg %p1887_p10  ;;  %p1894_p2 = por %p1893_p0, %p1892_p6 }
  0x49   : > { %p1895_p7 = pnand %p1894_p2, %p1888_p3 }
  0x4b   : > { %1898 = shalt.err (!%p1895_p7)
}
  0x4c   : > { %s1991_s21 = smov 256   ;;  %s1992_s26 = smov 128  }
  0x4d   : > { %s1993_s7 = smov 8   ;;  %p2408_p12 = scmp.ne.s32.totalorder %s2404_s25, 0 }
  0x4e   : > { %1583 = dma.hbm_to_vmem [thread:$0]  (!%p2407_p8), %s2133_s28, 16384, %s2138_s11, %s2140_s19, %s1991_s21, %s1992_s26, %s1993_s7  }
  0x4f   : > { %204 = sbr.rel (%p2408_p12) target bundleno = 459 (0x1cb), region = 32  ;;  %p2409_p5 = scmp.ne.s32.totalorder (!%p2408_p12), %s2399_s20, 0 }
  0x56   : > { %1952 = dma.done.wait (%p2409_p5), [#allocation3], 1024  }
  0x57   : > { %1954 = vsyncadd (%p2409_p5), [#allocation3], 4294966272  ;;  %s2175_s8 = sand.u32 1, %s1969_s13   ;;  %p2410_p8 = scmp.ne.s32.totalorder %s2401_s22, 0 }
  0x58   : > { %s1402_s6 = sshll.u32 %s2175_s8, 10  ;;  %s211_s9 = scalar_lea.sflag [#allocation6], %s2175_s8 }
  0x59   : > { %s2179_s4 = scalar_lea.vmem [#allocation5], %s1402_s6 }
  0x5a   : > { %1956 = dma.done.wait (%p2410_p8), %s211_s9, 16384  }
  0x5b   : > { %1958 = vsyncadd (%p2410_p8), %s211_s9, 4294950912  ;;  %v1649_v0 = vld [vmem:[%s2179_s4 + $0x4] ss:$8 sps:$4 sm:$0xff]   ;;  %v1653_v2 = vld [vmem:[%s2179_s4] ss:$8 sps:$4 sm:$0xff]   ;;  %s1404_s20 = sshll.u32 %s1977_s15, 1 }
  0x5c   : > { %v1651_v1 = vld [vmem:[%s2179_s4 + $0x204] ss:$8 sps:$4 sm:$0xff]   ;;  %1078 = vmatprep.subr.bf16.mxu1 %v1649_v0  ;;  %v1654_v3 = vld [vmem:[%s2179_s4 + $0x200] ss:$8 sps:$4 sm:$0xff]   ;;  %v1655_v4 = vld [vmem:[%s2179_s4 + $0x14] ss:$8 sps:$4 sm:$0xff]  }
  0x5d   : > { %1164 = vmatprep.subr.bf16.mxu0 %v1651_v1  ;;  %1079 = vmatpush1.bf16.msra.mxu1 %v1653_v2  ;;  %v1657_v5 = vld [vmem:[%s2179_s4 + $0x214] ss:$8 sps:$4 sm:$0xff]   ;;  %v1659_v6 = vld [vmem:[%s2179_s4 + $0x10] ss:$8 sps:$4 sm:$0xff]   ;;  %v1661_v8 = vld [vmem:[%s2179_s4 + $0x24] ss:$8 sps:$4 sm:$0xff]  }
  0x5e   : > { %1165 = vmatpush1.bf16.msra.mxu0 %v1654_v3  ;;  %1080 = vmatprep.subr.bf16.mxu1 %v1655_v4  ;;  %v1660_v7 = vld [vmem:[%s2179_s4 + $0x210] ss:$8 sps:$4 sm:$0xff]   ;;  %v1663_v9 = vld [vmem:[%s2179_s4 + $0x224] ss:$8 sps:$4 sm:$0xff]   ;;  %v1665_v10 = vld [vmem:[%s2179_s4 + $0x20] ss:$8 sps:$4 sm:$0xff]  }
  0x5f   : > { %1166 = vmatprep.subr.bf16.mxu0 %v1657_v5  ;;  %v1666_v11 = vld [vmem:[%s2179_s4 + $0x220] ss:$8 sps:$4 sm:$0xff]   ;;  %v1667_v12 = vld [vmem:[%s2179_s4 + $0x34] ss:$8 sps:$4 sm:$0xff]   ;;  %v1671_v14 = vld [vmem:[%s2179_s4 + $0x30] ss:$8 sps:$4 sm:$0xff]  }
  0x60   : > { %v1669_v13 = vld [vmem:[%s2179_s4 + $0x234] ss:$8 sps:$4 sm:$0xff]   ;;  %v1672_v15 = vld [vmem:[%s2179_s4 + $0x230] ss:$8 sps:$4 sm:$0xff]   ;;  %v1673_v16 = vld [vmem:[%s2179_s4 + $0x44] ss:$8 sps:$4 sm:$0xff]  }
  0x61   : > { %1081 = vmatpush1.bf16.msra.mxu1 %v1659_v6  ;;  %v1675_v17 = vld [vmem:[%s2179_s4 + $0x244] ss:$8 sps:$4 sm:$0xff]   ;;  %v1677_v18 = vld [vmem:[%s2179_s4 + $0x40] ss:$8 sps:$4 sm:$0xff]   ;;  %v1679_v20 = vld [vmem:[%s2179_s4 + $0x54] ss:$8 sps:$4 sm:$0xff]  }
  0x62   : > { %1167 = vmatpush1.bf16.msra.mxu0 %v1660_v7  ;;  %1082 = vmatprep.subr.bf16.mxu1 %v1661_v8  ;;  %v1678_v19 = vld [vmem:[%s2179_s4 + $0x240] ss:$8 sps:$4 sm:$0xff]   ;;  %v1681_v21 = vld [vmem:[%s2179_s4 + $0x254] ss:$8 sps:$4 sm:$0xff]   ;;  %v1683_v22 = vld [vmem:[%s2179_s4 + $0x50] ss:$8 sps:$4 sm:$0xff]  }
  0x63   : > { %1168 = vmatprep.subr.bf16.mxu0 %v1663_v9  ;;  %v1684_v23 = vld [vmem:[%s2179_s4 + $0x250] ss:$8 sps:$4 sm:$0xff]   ;;  %v1685_v24 = vld [vmem:[%s2179_s4 + $0x64] ss:$8 sps:$4 sm:$0xff]   ;;  %v1689_v26 = vld [vmem:[%s2179_s4 + $0x60] ss:$8 sps:$4 sm:$0xff]  }
  0x64   : > { %v1687_v25 = vld [vmem:[%s2179_s4 + $0x264] ss:$8 sps:$4 sm:$0xff]   ;;  %v1690_v27 = vld [vmem:[%s2179_s4 + $0x260] ss:$8 sps:$4 sm:$0xff]   ;;  %v1691_v28 = vld [vmem:[%s2179_s4 + $0x74] ss:$8 sps:$4 sm:$0xff]  }
  0x65   : > { %1083 = vmatpush1.bf16.msra.mxu1 %v1665_v10  ;;  %v1693_v29 = vld [vmem:[%s2179_s4 + $0x274] ss:$8 sps:$4 sm:$0xff]   ;;  %v1695_v30 = vld [vmem:[%s2179_s4 + $0x70] ss:$8 sps:$4 sm:$0xff]   ;;  %v1697_v32 = vld [vmem:[%s2179_s4 + $0x84] ss:$8 sps:$4 sm:$0xff]  }
  0x66   : > { %1169 = vmatpush1.bf16.msra.mxu0 %v1666_v11  ;;  %1084 = vmatprep.subr.bf16.mxu1 %v1667_v12  ;;  %v1696_v31 = vld [vmem:[%s2179_s4 + $0x270] ss:$8 sps:$4 sm:$0xff]   ;;  %v1699_v33 = vld [vmem:[%s2179_s4 + $0x284] ss:$8 sps:$4 sm:$0xff]   ;;  %v1701_v34 = vld [vmem:[%s2179_s4 + $0x80] ss:$8 sps:$4 sm:$0xff]  }
  0x67   : > { %1170 = vmatprep.subr.bf16.mxu0 %v1669_v13  ;;  %v1702_v35 = vld [vmem:[%s2179_s4 + $0x280] ss:$8 sps:$4 sm:$0xff]   ;;  %v1703_v36 = vld [vmem:[%s2179_s4 + $0x94] ss:$8 sps:$4 sm:$0xff]   ;;  %v1707_v38 = vld [vmem:[%s2179_s4 + $0x90] ss:$8 sps:$4 sm:$0xff]  }
  0x68   : > { %v1705_v37 = vld [vmem:[%s2179_s4 + $0x294] ss:$8 sps:$4 sm:$0xff]   ;;  %v1708_v39 = vld [vmem:[%s2179_s4 + $0x290] ss:$8 sps:$4 sm:$0xff]   ;;  %v1709_v40 = vld [vmem:[%s2179_s4 + $0xa4] ss:$8 sps:$4 sm:$0xff]  }
  0x69   : > { %1085 = vmatpush1.bf16.msra.mxu1 %v1671_v14  ;;  %v1711_v41 = vld [vmem:[%s2179_s4 + $0x2a4] ss:$8 sps:$4 sm:$0xff]   ;;  %v1713_v42 = vld [vmem:[%s2179_s4 + $0xa0] ss:$8 sps:$4 sm:$0xff]   ;;  %v1715_v44 = vld [vmem:[%s2179_s4 + $0xb4] ss:$8 sps:$4 sm:$0xff]  }
  0x6a   : > { %1171 = vmatpush1.bf16.msra.mxu0 %v1672_v15  ;;  %1086 = vmatprep.subr.bf16.mxu1 %v1673_v16  ;;  %v1714_v43 = vld [vmem:[%s2179_s4 + $0x2a0] ss:$8 sps:$4 sm:$0xff]   ;;  %v1717_v45 = vld [vmem:[%s2179_s4 + $0x2b4] ss:$8 sps:$4 sm:$0xff]   ;;  %v1719_v46 = vld [vmem:[%s2179_s4 + $0xb0] ss:$8 sps:$4 sm:$0xff]  }
  0x6b   : > { %1172 = vmatprep.subr.bf16.mxu0 %v1675_v17  ;;  %v1720_v47 = vld [vmem:[%s2179_s4 + $0x2b0] ss:$8 sps:$4 sm:$0xff]   ;;  %v250_v48 = vld [vmem:[#allocation2] sm:$0xff]  ;;  %v1727_v58 = vld [vmem:[%s2179_s4 + $0xd4] ss:$8 sps:$4 sm:$0xff]   ;;  %p244_p9 = scmp.lt.s32.totalorder %s1404_s20, 3 }
  0x6c   : > { %v254_v49 = vld [vmem:[#allocation2 + $0x20] sm:$0xff]  ;;  %v252_v53 = vld [vmem:[#allocation2 + $0x10] sm:$0xff]  ;;  %s1403_s28 = sshll.u32 %s2175_s8, 4  ;;  %s1551_s5 = sshll.u32 %s1977_s15, 7 }
  0x6d   : > { %1087 = vmatpush1.bf16.msra.mxu1 %v1677_v18  ;;  %v1721_v50 = vld [vmem:[%s2179_s4 + $0xc4] ss:$8 sps:$4 sm:$0xff]   ;;  %v1406_v52 = vcombine.high %v250_v48, %v254_v49  ;;  %v256_v54 = vld [vmem:[#allocation2 + $0x30] sm:$0xff]  ;;  %v1725_v56 = vld [vmem:[%s2179_s4 + $0xc0] ss:$8 sps:$4 sm:$0xff]   ;;  %v1405_v8 = vcombine.low %v250_v48, %v254_v49  ;;  %s2422_s20 = smov (!%p244_p9, %s1404_s20), 3  ;;  %s2340_s21 = scalar_lea.hbm %s2392_s3, %s1551_s5 }
  0x6e   : > { %1173 = vmatpush1.bf16.msra.mxu0 %v1678_v19  ;;  %1088 = vmatprep.subr.bf16.mxu1 %v1679_v20  ;;  %v1723_v51 = vld [vmem:[%s2179_s4 + $0x2c4] ss:$8 sps:$4 sm:$0xff]   ;;  %v1410_v55 = vcombine.high %v252_v53, %v256_v54  ;;  %v1726_v57 = vld [vmem:[%s2179_s4 + $0x2c0] ss:$8 sps:$4 sm:$0xff]   ;;  %v1729_v59 = vld [vmem:[%s2179_s4 + $0x2d4] ss:$8 sps:$4 sm:$0xff]   ;;  %v1409_v10 = vcombine.low %v252_v53, %v256_v54  ;;  %s246_s29 = scalar_lea.vmem %s2391_s2, %s2422_s20 }
  0x6f   : > { %1174 = vmatprep.subr.bf16.mxu0 %v1681_v21  ;;  %1110 = vmatprep.mubr.bf16.mxu1 %v1406_v52  ;;  %v1731_v60 = vld [vmem:[%s2179_s4 + $0xd0] ss:$8 sps:$4 sm:$0xff]   ;;  %v1733_v62 = vld [vmem:[%s2179_s4 + $0xe4] ss:$8 sps:$4 sm:$0xff]   ;;  %v1737_v0 = vld [vmem:[%s2179_s4 + $0xe0] ss:$8 sps:$4 sm:$0xff]  }
  0x70   : > { %1196 = vmatprep.mubr.bf16.mxu0 %v1410_v55  ;;  %v1732_v61 = vld [vmem:[%s2179_s4 + $0x2d0] ss:$8 sps:$4 sm:$0xff]   ;;  %v1735_v63 = vld [vmem:[%s2179_s4 + $0x2e4] ss:$8 sps:$4 sm:$0xff]   ;;  %v1738_v1 = vld [vmem:[%s2179_s4 + $0x2e0] ss:$8 sps:$4 sm:$0xff]  }
  0x71   : > { %1089 = vmatpush1.bf16.msra.mxu1 %v1683_v22  ;;  %v1739_v2 = vld [vmem:[%s2179_s4 + $0xf4] ss:$8 sps:$4 sm:$0xff]   ;;  %v1743_v4 = vld [vmem:[%s2179_s4 + $0xf0] ss:$8 sps:$4 sm:$0xff]   ;;  %v1747_v6 = vld [vmem:[%s2179_s4 + $0x104] ss:$8 sps:$4 sm:$0xff]  }
  0x72   : > { %1175 = vmatpush1.bf16.msra.mxu0 %v1684_v23  ;;  %1090 = vmatprep.subr.bf16.mxu1 %v1685_v24  ;;  %v1741_v3 = vld [vmem:[%s2179_s4 + $0x2f4] ss:$8 sps:$4 sm:$0xff]   ;;  %v1744_v5 = vld [vmem:[%s2179_s4 + $0x2f0] ss:$8 sps:$4 sm:$0xff]   ;;  %v1750_v7 = vld [vmem:[%s2179_s4 + $0x304] ss:$8 sps:$4 sm:$0xff]  }
  0x73   : > { %1176 = vmatprep.subr.bf16.mxu0 %v1687_v25  ;;  %v1745_v9 = vld [vmem:[%s2179_s4 + $0x100] ss:$8 sps:$4 sm:$0xff]   ;;  %v1753_v12 = vld [vmem:[%s2179_s4 + $0x114] ss:$8 sps:$4 sm:$0xff]   ;;  %v1751_v14 = vld [vmem:[%s2179_s4 + $0x110] ss:$8 sps:$4 sm:$0xff]  }
  0x74   : > { %v1748_v11 = vld [vmem:[%s2179_s4 + $0x300] ss:$8 sps:$4 sm:$0xff]   ;;  %v1756_v13 = vld [vmem:[%s2179_s4 + $0x314] ss:$8 sps:$4 sm:$0xff]   ;;  %v1754_v15 = vld [vmem:[%s2179_s4 + $0x310] ss:$8 sps:$4 sm:$0xff]  }
  0x75   : > { %1091 = vmatpush1.bf16.msra.mxu1 %v1689_v26  ;;  %v1759_v16 = vld [vmem:[%s2179_s4 + $0x124] ss:$8 sps:$4 sm:$0xff]   ;;  %v1757_v18 = vld [vmem:[%s2179_s4 + $0x120] ss:$8 sps:$4 sm:$0xff]   ;;  %v1765_v20 = vld [vmem:[%s2179_s4 + $0x134] ss:$8 sps:$4 sm:$0xff]  }
  0x76   : > { %1177 = vmatpush1.bf16.msra.mxu0 %v1690_v27  ;;  %1092 = vmatprep.subr.bf16.mxu1 %v1691_v28  ;;  %v1762_v17 = vld [vmem:[%s2179_s4 + $0x324] ss:$8 sps:$4 sm:$0xff]   ;;  %v1760_v19 = vld [vmem:[%s2179_s4 + $0x320] ss:$8 sps:$4 sm:$0xff]   ;;  %v1768_v21 = vld [vmem:[%s2179_s4 + $0x334] ss:$8 sps:$4 sm:$0xff]  }
  0x77   : > { %1178 = vmatprep.subr.bf16.mxu0 %v1693_v29  ;;  %v1763_v22 = vld [vmem:[%s2179_s4 + $0x130] ss:$8 sps:$4 sm:$0xff]   ;;  %v1771_v24 = vld [vmem:[%s2179_s4 + $0x144] ss:$8 sps:$4 sm:$0xff]   ;;  %v1769_v26 = vld [vmem:[%s2179_s4 + $0x140] ss:$8 sps:$4 sm:$0xff]  }
  0x78   : > { %v1766_v23 = vld [vmem:[%s2179_s4 + $0x330] ss:$8 sps:$4 sm:$0xff]   ;;  %v1774_v25 = vld [vmem:[%s2179_s4 + $0x344] ss:$8 sps:$4 sm:$0xff]   ;;  %v1772_v27 = vld [vmem:[%s2179_s4 + $0x340] ss:$8 sps:$4 sm:$0xff]  }
  0x79   : > { %1093 = vmatpush1.bf16.msra.mxu1 %v1695_v30  ;;  %v1777_v28 = vld [vmem:[%s2179_s4 + $0x154] ss:$8 sps:$4 sm:$0xff]   ;;  %v1775_v30 = vld [vmem:[%s2179_s4 + $0x150] ss:$8 sps:$4 sm:$0xff]   ;;  %v1793_v48 = vld [vmem:[%s2179_s4 + $0x180] ss:$8 sps:$4 sm:$0xff]  }
  0x7a   : > { %1179 = vmatpush1.bf16.msra.mxu0 %v1696_v31  ;;  %1094 = vmatprep.subr.bf16.mxu1 %v1697_v32  ;;  %v1780_v29 = vld [vmem:[%s2179_s4 + $0x354] ss:$8 sps:$4 sm:$0xff]   ;;  %v1778_v31 = vld [vmem:[%s2179_s4 + $0x350] ss:$8 sps:$4 sm:$0xff]   ;;  %v1783_v32 = vld [vmem:[%s2179_s4 + $0x164] ss:$8 sps:$4 sm:$0xff]  }
  0x7b   : > { %1180 = vmatprep.subr.bf16.mxu0 %v1699_v33  ;;  %v1786_v33 = vld [vmem:[%s2179_s4 + $0x364] ss:$8 sps:$4 sm:$0xff]   ;;  %v1796_v49 = vld [vmem:[%s2179_s4 + $0x380] ss:$8 sps:$4 sm:$0xff]   ;;  %v1799_v52 = vld [vmem:[%s2179_s4 + $0x190] ss:$8 sps:$4 sm:$0xff]  }
  0x7c   : > { %v1802_v53 = vld [vmem:[%s2179_s4 + $0x390] ss:$8 sps:$4 sm:$0xff]   ;;  %v1807_v54 = vld [vmem:[%s2179_s4 + $0x1a4] ss:$8 sps:$4 sm:$0xff]   ;;  %s240_s11 = scalar_lea.vmem [#allocation7], %s1403_s28  ;;  %s1269_s26 = scalar_lea.sflag [#allocation4], %s2175_s8 }
  0x7d   : > { %1095 = vmatpush1.bf16.msra.mxu1 %v1701_v34  ;;  %v2275_v34 = vld [vmem:[#allocation2 + $0x8] sm:$0xff]  ;;  %s1285_s19 = sshll.u32 %s240_s11, 4  ;;  %p2411_p13 = scmp.ne.s32.totalorder %s2402_s23, 0  ;;  %s2335_s19 = int_to_ptr.vmem [resolvable:$true] %s1285_s19 }
  0x7e   : > { %1181 = vmatpush1.bf16.msra.mxu0 %v1702_v35  ;;  %1096 = vmatprep.subr.bf16.mxu1 %v1703_v36  ;;  %v2277_v35 = vld [vmem:[#allocation2 + $0x28] sm:$0xff]  ;;  %v2279_v36 = vld [vmem:[#allocation2 + $0x18] sm:$0xff]  ;;  %s1899_s7 = scalar_lea.vmem %s2335_s19, 256  ;;  %s1994_s15 = smov [#allocation7]  }
  0x7f   : > { %1182 = vmatprep.subr.bf16.mxu0 %v1705_v37  ;;  %v2281_v37 = vld [vmem:[#allocation2 + $0x38] sm:$0xff]  ;;  %v1810_v55 = vld [vmem:[%s2179_s4 + $0x3a4] ss:$8 sps:$4 sm:$0xff]   ;;  %p1900_p11 = scmp.ne.s32.totalorder %s2335_s19, %s1899_s7  ;;  %s1903_s6 = sshll.u32 %s1994_s15, 4  ;;  %s1904_s6 = int_to_ptr.vmem [resolvable:$false] %s1903_s6 }
  0x80   : > { %s1905_s9 = scalar_lea.vmem %s1904_s6, 512  ;;  %p1906_p10 = scmp.lt.s32.totalorder %s2335_s19, %s1904_s6 }
  0x81   : > { %1097 = vmatpush1.bf16.msra.mxu1 %v1707_v38  ;;  %v1781_v38 = vld [vmem:[%s2179_s4 + $0x160] ss:$8 sps:$4 sm:$0xff]   ;;  %p1901_p4 = pnand %p1900_p11, %p2411_p13  ;;  %p1907_p3 = scmp.lt.s32.totalorder %s1905_s9, %s1899_s7 }
  0x82   : > { %1183 = vmatpush1.bf16.msra.mxu0 %v1708_v39  ;;  %1098 = vmatprep.subr.bf16.mxu1 %v1709_v40  ;;  %v1784_v39 = vld [vmem:[%s2179_s4 + $0x360] ss:$8 sps:$4 sm:$0xff]   ;;  %v1408_v40 = vcombine.high %v2275_v34, %v2277_v35 }
  0x83   : > { %1184 = vmatprep.subr.bf16.mxu0 %v1711_v41  ;;  %v1789_v41 = vld [vmem:[%s2179_s4 + $0x174] ss:$8 sps:$4 sm:$0xff]   ;;  %p1902_p1 = pneg %p1901_p4  ;;  %p1908_p6 = por %p1907_p3, %p1906_p10 }
  0x85   : > { %1099 = vmatpush1.bf16.msra.mxu1 %v1713_v42  ;;  %v1792_v42 = vld [vmem:[%s2179_s4 + $0x374] ss:$8 sps:$4 sm:$0xff]   ;;  %p1909_p0 = pnand %p1908_p6, %p1902_p1 }
  0x86   : > { %1185 = vmatpush1.bf16.msra.mxu0 %v1714_v43  ;;  %1100 = vmatprep.subr.bf16.mxu1 %v1715_v44  ;;  %v1412_v43 = vcombine.high %v2279_v36, %v2281_v37  ;;  %v1787_v44 = vld [vmem:[%s2179_s4 + $0x170] ss:$8 sps:$4 sm:$0xff]  }
  0x87   : > { %1186 = vmatprep.subr.bf16.mxu0 %v1717_v45  ;;  %v1790_v45 = vld [vmem:[%s2179_s4 + $0x370] ss:$8 sps:$4 sm:$0xff]  }
  0x89   : > { %1101 = vmatpush1.bf16.msra.mxu1 %v1719_v46  ;;  %v1795_v46 = vld [vmem:[%s2179_s4 + $0x184] ss:$8 sps:$4 sm:$0xff]  }
  0x8a   : > { %1187 = vmatpush1.bf16.msra.mxu0 %v1720_v47  ;;  %1102 = vmatprep.subr.bf16.mxu1 %v1721_v50  ;;  %v1798_v47 = vld [vmem:[%s2179_s4 + $0x384] ss:$8 sps:$4 sm:$0xff]   ;;  %v1801_v50 = vld [vmem:[%s2179_s4 + $0x194] ss:$8 sps:$4 sm:$0xff]  }
  0x8b   : > { %1188 = vmatprep.subr.bf16.mxu0 %v1723_v51  ;;  %v1804_v51 = vld [vmem:[%s2179_s4 + $0x394] ss:$8 sps:$4 sm:$0xff]  }
  0x8d   : > { %1103 = vmatpush1.bf16.msra.mxu1 %v1725_v56  ;;  %v1805_v56 = vld [vmem:[%s2179_s4 + $0x1a0] ss:$8 sps:$4 sm:$0xff]  }
  0x8e   : > { %1189 = vmatpush1.bf16.msra.mxu0 %v1726_v57  ;;  %1104 = vmatprep.subr.bf16.mxu1 %v1727_v58  ;;  %v1808_v57 = vld [vmem:[%s2179_s4 + $0x3a0] ss:$8 sps:$4 sm:$0xff]   ;;  %v1813_v58 = vld [vmem:[%s2179_s4 + $0x1b4] ss:$8 sps:$4 sm:$0xff]  }
  0x8f   : > { %1190 = vmatprep.subr.bf16.mxu0 %v1729_v59  ;;  %v1816_v59 = vld [vmem:[%s2179_s4 + $0x3b4] ss:$8 sps:$4 sm:$0xff]  }
  0x91   : > { %1105 = vmatpush1.bf16.msra.mxu1 %v1731_v60  ;;  %v1811_v60 = vld [vmem:[%s2179_s4 + $0x1b0] ss:$8 sps:$4 sm:$0xff]  }
  0x92   : > { %1191 = vmatpush1.bf16.msra.mxu0 %v1732_v61  ;;  %1106 = vmatprep.subr.bf16.mxu1 %v1733_v62  ;;  %v1814_v61 = vld [vmem:[%s2179_s4 + $0x3b0] ss:$8 sps:$4 sm:$0xff]   ;;  %v1819_v62 = vld [vmem:[%s2179_s4 + $0x1c4] ss:$8 sps:$4 sm:$0xff]  }
  0x93   : > { %1192 = vmatprep.subr.bf16.mxu0 %v1735_v63  ;;  %v1822_v63 = vld [vmem:[%s2179_s4 + $0x3c4] ss:$8 sps:$4 sm:$0xff]  }
  0x95   : > { %1107 = vmatpush1.bf16.msra.mxu1 %v1737_v0  ;;  %v1817_v0 = vld [vmem:[%s2179_s4 + $0x1c0] ss:$8 sps:$4 sm:$0xff]  }
  0x96   : > { %1193 = vmatpush1.bf16.msra.mxu0 %v1738_v1  ;;  %1108 = vmatprep.subr.bf16.mxu1 %v1739_v2  ;;  %v1820_v1 = vld [vmem:[%s2179_s4 + $0x3c0] ss:$8 sps:$4 sm:$0xff]   ;;  %v1825_v2 = vld [vmem:[%s2179_s4 + $0x1d4] ss:$8 sps:$4 sm:$0xff]  }
  0x97   : > { %1194 = vmatprep.subr.bf16.mxu0 %v1741_v3  ;;  %v1828_v3 = vld [vmem:[%s2179_s4 + $0x3d4] ss:$8 sps:$4 sm:$0xff]  }
  0x99   : > { %1109 = vmatpush1.bf16.msra.mxu1 %v1743_v4  ;;  %v1823_v4 = vld [vmem:[%s2179_s4 + $0x1d0] ss:$8 sps:$4 sm:$0xff]  }
  0x9a   : > { %1195 = vmatpush1.bf16.msra.mxu0 %v1744_v5  ;;  %1121 = vmatprep.subr.bf16.mxu1 %v1747_v6  ;;  %v1826_v5 = vld [vmem:[%s2179_s4 + $0x3d0] ss:$8 sps:$4 sm:$0xff]   ;;  %v1831_v6 = vld [vmem:[%s2179_s4 + $0x1e4] ss:$8 sps:$4 sm:$0xff]  }
  0x9b   : > { %1207 = vmatprep.subr.bf16.mxu0 %v1750_v7  ;;  %v1834_v7 = vld [vmem:[%s2179_s4 + $0x3e4] ss:$8 sps:$4 sm:$0xff]  }
  0x9c   : > { %1111 = vmatmul.mubr.bf16.vlgmr.msra.gmra.mrb[0].mxu1 %v1405_v8  ;;  %v1829_v8 = vld [vmem:[%s2179_s4 + $0x1e0] ss:$8 sps:$4 sm:$0xff]  }
  0x9d   : > { %1197 = vmatmul.mubr.bf16.vlgmr.msra.gmra.mrb[0].mxu0 %v1409_v10  ;;  %1122 = vmatpush1.bf16.msra.mxu1 %v1745_v9  ;;  %v1832_v9 = vld [vmem:[%s2179_s4 + $0x3e0] ss:$8 sps:$4 sm:$0xff]   ;;  %v1837_v10 = vld [vmem:[%s2179_s4 + $0x1f4] ss:$8 sps:$4 sm:$0xff]  }
  0x9e   : > { %1208 = vmatpush1.bf16.msra.mxu0 %v1748_v11  ;;  %1123 = vmatprep.subr.bf16.mxu1 %v1753_v12  ;;  %v1840_v11 = vld [vmem:[%s2179_s4 + $0x3f4] ss:$8 sps:$4 sm:$0xff]   ;;  %v1835_v12 = vld [vmem:[%s2179_s4 + $0x1f0] ss:$8 sps:$4 sm:$0xff]  }
  0x9f   : > { %1209 = vmatprep.subr.bf16.mxu0 %v1756_v13  ;;  %1153 = vmatprep.mubr.bf16.mxu1 %v1408_v40  ;;  %v1838_v13 = vld [vmem:[%s2179_s4 + $0x3f0] ss:$8 sps:$4 sm:$0xff]  }
  0xa0   : > { %1239 = vmatprep.mubr.bf16.mxu0 %v1412_v43 }
  0xa1   : > { %1124 = vmatpush1.bf16.msra.mxu1 %v1751_v14  ;;  %v1407_v14 = vcombine.low %v2275_v34, %v2277_v35 }
  0xa2   : > { %1210 = vmatpush1.bf16.msra.mxu0 %v1754_v15  ;;  %1125 = vmatprep.subr.bf16.mxu1 %v1759_v16  ;;  %v1411_v15 = vcombine.low %v2279_v36, %v2281_v37  ;;  %v388_v16 = vlaneseq }
  0xa3   : > { %1211 = vmatprep.subr.bf16.mxu0 %v1762_v17 }
  0xa4   : > { %v389_v17 = vshrl.u32 %v388_v16, 7 }
  0xa5   : > { %1126 = vmatpush1.bf16.msra.mxu1 %v1757_v18 }
  0xa6   : > { %1212 = vmatpush1.bf16.msra.mxu0 %v1760_v19  ;;  %1127 = vmatprep.subr.bf16.mxu1 %v1765_v20  ;;  %v390_v18 = vsub.s32 0, %v389_v17  ;;  %v386_v19 = vld [vmem:[%s246_s29] sm:$0x3]  ;;  %v394_v20 = vsub.s32 1, %v389_v17 }
  0xa7   : > { %1213 = vmatprep.subr.bf16.mxu0 %v1768_v21 }
  0xa8   : > { %v391_v21 = vrot.slane %v386_v19, %v390_v18 }
  0xa9   : > { %1128 = vmatpush1.bf16.msra.mxu1 %v1763_v22  ;;  %v395_v22 = vrot.slane %v386_v19, %v394_v20 }
  0xaa   : > { %1214 = vmatpush1.bf16.msra.mxu0 %v1766_v23  ;;  %1129 = vmatprep.subr.bf16.mxu1 %v1771_v24 }
  0xab   : > { %1215 = vmatprep.subr.bf16.mxu0 %v1774_v25 }
  0xad   : > { %1130 = vmatpush1.bf16.msra.mxu1 %v1769_v26 }
  0xae   : > { %1216 = vmatpush1.bf16.msra.mxu0 %v1772_v27  ;;  %1131 = vmatprep.subr.bf16.mxu1 %v1777_v28 }
  0xaf   : > { %1217 = vmatprep.subr.bf16.mxu0 %v1780_v29 }
  0xb1   : > { %1132 = vmatpush1.bf16.msra.mxu1 %v1775_v30 }
  0xb2   : > { %1218 = vmatpush1.bf16.msra.mxu0 %v1778_v31  ;;  %1133 = vmatprep.subr.bf16.mxu1 %v1783_v32 }
  0xb3   : > { %1219 = vmatprep.subr.bf16.mxu0 %v1786_v33 }
  0xb5   : > { %1134 = vmatpush1.bf16.msra.mxu1 %v1781_v38 }
  0xb6   : > { %1220 = vmatpush1.bf16.msra.mxu0 %v1784_v39  ;;  %1135 = vmatprep.subr.bf16.mxu1 %v1789_v41 }
  0xb7   : > { %1221 = vmatprep.subr.bf16.mxu0 %v1792_v42 }
  0xb9   : > { %1136 = vmatpush1.bf16.msra.mxu1 %v1787_v44 }
  0xba   : > { %1222 = vmatpush1.bf16.msra.mxu0 %v1790_v45  ;;  %1137 = vmatprep.subr.bf16.mxu1 %v1795_v46 }
  0xbb   : > { %1223 = vmatprep.subr.bf16.mxu0 %v1798_v47 }
  0xbd   : > { %1138 = vmatpush1.bf16.msra.mxu1 %v1793_v48 }
  0xbe   : > { %1224 = vmatpush1.bf16.msra.mxu0 %v1796_v49  ;;  %1139 = vmatprep.subr.bf16.mxu1 %v1801_v50 }
  0xbf   : > { %1225 = vmatprep.subr.bf16.mxu0 %v1804_v51 }
  0xc1   : > { %1140 = vmatpush1.bf16.msra.mxu1 %v1799_v52 }
  0xc2   : > { %1226 = vmatpush1.bf16.msra.mxu0 %v1802_v53  ;;  %1141 = vmatprep.subr.bf16.mxu1 %v1807_v54 }
  0xc3   : > { %1227 = vmatprep.subr.bf16.mxu0 %v1810_v55 }
  0xc5   : > { %1142 = vmatpush1.bf16.msra.mxu1 %v1805_v56 }
  0xc6   : > { %1228 = vmatpush1.bf16.msra.mxu0 %v1808_v57  ;;  %1143 = vmatprep.subr.bf16.mxu1 %v1813_v58 }
  0xc7   : > { %1229 = vmatprep.subr.bf16.mxu0 %v1816_v59 }
  0xc9   : > { %1144 = vmatpush1.bf16.msra.mxu1 %v1811_v60 }
  0xca   : > { %1230 = vmatpush1.bf16.msra.mxu0 %v1814_v61  ;;  %1145 = vmatprep.subr.bf16.mxu1 %v1819_v62 }
  0xcb   : > { %1231 = vmatprep.subr.bf16.mxu0 %v1822_v63 }
  0xcd   : > { %1146 = vmatpush1.bf16.msra.mxu1 %v1817_v0 }
  0xce   : > { %1232 = vmatpush1.bf16.msra.mxu0 %v1820_v1  ;;  %1147 = vmatprep.subr.bf16.mxu1 %v1825_v2 }
  0xcf   : > { %1233 = vmatprep.subr.bf16.mxu0 %v1828_v3 }
  0xd1   : > { %1148 = vmatpush1.bf16.msra.mxu1 %v1823_v4 }
  0xd2   : > { %1234 = vmatpush1.bf16.msra.mxu0 %v1826_v5  ;;  %1149 = vmatprep.subr.bf16.mxu1 %v1831_v6 }
  0xd3   : > { %1235 = vmatprep.subr.bf16.mxu0 %v1834_v7 }
  0xd5   : > { %1150 = vmatpush1.bf16.msra.mxu1 %v1829_v8 }
  0xd6   : > { %1236 = vmatpush1.bf16.msra.mxu0 %v1832_v9  ;;  %1151 = vmatprep.subr.bf16.mxu1 %v1837_v10 }
  0xd7   : > { %1237 = vmatprep.subr.bf16.mxu0 %v1840_v11 }
  0xd9   : > { %1152 = vmatpush1.bf16.msra.mxu1 %v1835_v12 }
  0xda   : > { %1238 = vmatpush1.bf16.msra.mxu0 %v1838_v13 }
  0xdc   : > { %1154 = vmatmul.mubr.bf16.vlgmr.msra.gmra.mrb[0].mxu1 %v1407_v14 }
  0xdd   : > { %1240 = vmatmul.mubr.bf16.vlgmr.msra.gmra.mrb[0].mxu0 %v1411_v15 }
 0x1af   : > { %v1155_v23 = vpop.f32.mrb[0].mxu1 }
 0x1b0   : > { %v1241_v24 = vpop.f32.mrb[0].mxu0  ;;  %v1552_v25 = vadd.f32 %v1155_v23, %v391_v21  ;;  %v1157_v26 = vpop.f32.mrb[1].mxu1 }
 0x1b1   : > { %v1243_v27 = vpop.f32.mrb[1].mxu0  ;;  %v1554_v28 = vadd.f32 %v1157_v26, %v395_v22  ;;  %v1159_v29 = vpop.f32.mrb[2].mxu1 }
 0x1b2   : > { %v1245_v30 = vpop.f32.mrb[2].mxu0  ;;  %v1553_v31 = vadd.f32 %v1552_v25, %v1241_v24  ;;  %v1556_v32 = vadd.f32 %v1159_v29, %v391_v21  ;;  %v1161_v33 = vpop.f32.mrb[3].mxu1 }
 0x1b3   : > { %v1247_v34 = vpop.f32.mrb[3].mxu0  ;;  %v1555_v35 = vadd.f32 %v1554_v28, %v1243_v27  ;;  %v1558_v36 = vadd.f32 %v1161_v33, %v395_v22 }
 0x1b4   : > { %v1250_v37 = vmax.f32 %v1553_v31, 0.0  ;;  %v1557_v38 = vadd.f32 %v1556_v32, %v1245_v30 }
 0x1b5   : > { %v1251_v39 = vmax.f32 %v1555_v35, 0.0  ;;  %v1559_v40 = vadd.f32 %v1558_v36, %v1247_v34 }
 0x1b6   : > { %v1252_v41 = vmax.f32 %v1557_v38, 0.0 }
 0x1b7   : > { %v1549_v42 = vpack.c.bf16 %v1251_v39, %v1250_v37  ;;  %v1253_v43 = vmax.f32 %v1559_v40, 0.0 }
 0x1b9   : > { %1266 = vst [vmem:[%s240_s11] sm:$0xff] %v1549_v42  ;;  %v1550_v44 = vpack.c.bf16 %v1253_v43, %v1252_v41 }
 0x1bb   : > { %1267 = vst [vmem:[%s240_s11 + $0x8] sm:$0xff] %v1550_v44 }
 0x1bc   : > { %1912 = shalt.err (!%p1909_p0)
}
 0x1bd   : > { %s1913_s4 = scalar_lea.hbm %s2340_s21, 256  ;;  %s1917_s25 = scalar_lea.hbm %s2392_s3, 512 }
 0x1be   : > { %p1914_p2 = scmp.ne.s32.totalorder %s2340_s21, %s1913_s4  ;;  %p1918_p5 = scmp.lt.u32.totalorder %s2340_s21, %s2392_s3 }
 0x1bf   : > { %p1919_p8 = scmp.lt.u32.totalorder %s1917_s25, %s1913_s4  ;;  %p1921_p11 = scmp.lt.u32.totalorder %s1913_s4, %s2340_s21 }
 0x1c0   : > { %p1915_p7 = pnand %p1914_p2, %p2411_p13 }
 0x1c1   : > { %p1920_p9 = por %p1919_p8, %p1918_p5 }
 0x1c2   : > { %p1916_p12 = pneg %p1915_p7 }
 0x1c3   : > { %p1922_p4 = por %p1921_p11, %p1920_p9 }
 0x1c5   : > { %p1923_p1 = pnand %p1922_p4, %p1916_p12 }
 0x1c7   : > { %1926 = shalt.err (!%p1923_p1)
}
 0x1c8   : > { %s1995_s11 = smov 128   ;;  %s1996_s5 = smov 256  }
 0x1c9   : > { %s1997_s10 = smov 8  }
 0x1ca   : > { %1574 = dma.vmem_to_hbm [thread:$0]  (%p2411_p13), %s2335_s19, 256, %s2340_s21, %s1269_s26, %s1995_s11, %s1996_s5, %s1997_s10  }
 0x1cb PF: > { %s1300_s27 = sand.u32 1, %s1965_s12   ;;  %p2412_p10 = scmp.ne.s32.totalorder %s2403_s24, 0 }
 0x1cc   : > { %p2413_p3 = scmp.ge.s32.totalorder %s1985_s17, 2  ;;  %s1301_s7 = scalar_lea.sflag [#allocation4], %s1300_s27 }
 0x1ce   : > { %p1585_p6 = pnand %p2413_p3, %p2412_p10 }
 0x1d0   : > { %1960 = dma.done.wait (!%p1585_p6), %s1301_s7, 256  }
 0x1d1   : > { %1962 = vsyncadd (!%p1585_p6), %s1301_s7, 4294967040  ;;  %s20_s17 = sadd.s32 1, %s1985_s17   ;;  %s2414_s12 = smov %s1969_s13 }
 0x1d2   : > { %p17_p0 = scmp.ge.s32.totalorder %s20_s17, 4   ;;  %s2415_s13 = smov %s1973_s14 }
 0x1d3   : > { %s2416_s14 = smov %s2136_s18  ;;  %s2417_s15 = smov %s1981_s16 }
 0x1d4   : > { %s2418_s16 = smov %s2420_s30  ;;  %19 = sbr.rel (!%p17_p0) target bundleno = 7 (0x7), region = 86 }
 0x1db   :  { %1306 = vsyncpa [#allocation3], 1 }
 0x1dc   :  { %1308 = vsyncpa [#allocation3 + $0x1], 1 }
 0x1dd   :  { %1309 = vsyncpa [#allocation6], 1 }
 0x1de   :  { %1311 = vsyncpa [#allocation6 + $0x1], 1 }
 0x1df   :  { %1312 = vsyncpa [#allocation4], 1 }
 0x1e0   :  { %1314 = vsyncpa [#allocation4 + $0x1], 1 }

</bundles_post_ra>
